<compile_context>
chip_gen: v6e
topology: v6e:2x2x1
jax: 0.10.0
libtpu: 0.0.40
codegen_flags: <defaults>
</compile_context>

<pallas_src>
import functools

import jax
import jax.numpy as jnp
from jax.experimental import pallas as pl
from jax.experimental.pallas import tpu as pltpu

LANES = 128
# (4096, 128) f32 = 2 MiB per input block; 2 inputs x 2 pipeline buffers = 8 MiB,
# which fits the default scoped-VMEM budget on v5e (16 MiB), v6e (32 MiB), v7x (32 MiB).
TILE_ROWS = 4096


def _fused_contrib(p, t, *, inv_n, lower, upper, pw):
    """Per-element pre-scaled contribution to the total loss (f32)."""
    p = p.astype(jnp.float32)
    t = t.astype(jnp.float32)
    d = p - t
    pen = jnp.maximum(lower - p, 0.0) + jnp.maximum(p - upper, 0.0)
    return d * d * inv_n + pen * pw


def _single_block_kernel(p_ref, t_ref, out_ref, *, inv_n, lower, upper, pw):
    """Whole array is one block: reduce directly, write the scalar to SMEM."""
    contrib = _fused_contrib(p_ref[...], t_ref[...],
                             inv_n=inv_n, lower=lower, upper=upper, pw=pw)
    out_ref[0, 0] = jnp.sum(contrib)


def _tiled_kernel(p_ref, t_ref, acc_ref, *, inv_n, lower, upper, pw):
    """Streaming tiles; accumulate into the resident (1, 8, 128) output block."""
    i = pl.program_id(1)

    @pl.when(i == 0)
    def _init():
        acc_ref[...] = jnp.zeros_like(acc_ref)

    contrib = _fused_contrib(p_ref[...], t_ref[...],
                             inv_n=inv_n, lower=lower, upper=upper, pw=pw)
    # (tile_rows, 128) -> (tile_rows//8, 8, 128): layout-preserving reshape; the
    # leading-axis sum is pure VPU adds (no XLU). The only cross-lane reduction
    # happens once, over the (n_split, 8, 128) partials, in the JAX wrapper.
    acc_ref[...] += contrib.reshape(-1, 8, LANES).sum(axis=0, keepdims=True)


def constrained_loss(predictions, targets, *, lower_bound=0.0, upper_bound=100.0,
                     penalty_weight=1.0, tile_rows=TILE_ROWS):
    """total_loss = MSE(pred, tgt) + penalty_weight * (relu-lower + relu-upper penalties)."""
    assert predictions.shape == targets.shape
    assert tile_rows > 0 and tile_rows % 8 == 0
    n_elems = int(predictions.size)
    if n_elems == 0:
        return jnp.float32(0.0)

    # Plain Python scalars -> compile-time literals (no captured tracers).
    lower = float(lower_bound)
    upper = float(upper_bound)
    pw = float(penalty_weight)
    inv_n = 1.0 / float(n_elems)
    itemsize = jnp.dtype(predictions.dtype).itemsize

    # Keep native dtype; kernels cast to f32 on load (halves DMA bytes for bf16).
    p_flat = predictions.reshape(-1)
    t_flat = targets.reshape(-1)
    rows = -(-n_elems // LANES)  # ceil

    if rows <= tile_rows:
        # ----- single-block path (production (2,4,16,16) case) -----
        pad = rows * LANES - n_elems
        pad_correction = 0.0
        if pad:
            # Pad p and t with the SAME value, clamped into [lower, upper]: the MSE
            # term of the pad is exactly 0, and (for lower <= upper) both penalties
            # are 0 too, so no in-kernel tail mask is needed. The degenerate
            # lower > upper config gets an exact compile-time correction instead.
            pad_val = min(max(0.0, lower), upper)
            pad_correction = pad * pw * (max(lower - pad_val, 0.0) +
                                         max(pad_val - upper, 0.0))
            p_flat = jnp.pad(p_flat, (0, pad), constant_values=pad_val)
            t_flat = jnp.pad(t_flat, (0, pad), constant_values=pad_val)
        p2 = p_flat.reshape(rows, LANES)
        t2 = t_flat.reshape(rows, LANES)

        kernel = functools.partial(_single_block_kernel, inv_n=inv_n, lower=lower,
                                   upper=upper, pw=pw)
        out = pl.pallas_call(
            kernel,
            out_shape=jax.ShapeDtypeStruct((1, 1), jnp.float32),
            grid_spec=pltpu.PrefetchScalarGridSpec(
                num_scalar_prefetch=0,
                grid=(1,),
                in_specs=[
                    pl.BlockSpec((rows, LANES), lambda i: (0, 0)),
                    pl.BlockSpec((rows, LANES), lambda i: (0, 0)),
                ],
                out_specs=pl.BlockSpec(memory_space=pltpu.SMEM),
            ),
            compiler_params=pltpu.CompilerParams(dimension_semantics=("arbitrary",)),
            cost_estimate=pl.CostEstimate(flops=8 * rows * LANES, transcendentals=0,
                                          bytes_accessed=2 * rows * LANES * itemsize),
        )(p2, t2)
        total = out[0, 0]
        if pad_correction:
            total = total - jnp.float32(pad_correction)
        return total

    # ----- multi-tile streaming path -----
    tile_elems = tile_rows * LANES
    n_full_tiles = n_elems // tile_elems          # >= 1 on this path
    n_split = 2 if n_full_tiles >= 2 else 1       # shard stream across both TCs (v7x)
    tiles_per_core = n_full_tiles // n_split
    bulk_tiles = n_split * tiles_per_core
    bulk_elems = bulk_tiles * tile_elems

    # Only FULL tiles go through the kernel -> no padding, no full-array copy.
    # TODO(synk): to guarantee the prefix slice never materializes a copy, switch the
    # bulk input to memory_space=pl.ANY and fetch tiles with pltpu.make_async_copy.
    p_bulk = p_flat[:bulk_elems].reshape(bulk_tiles * tile_rows, LANES)
    t_bulk = t_flat[:bulk_elems].reshape(bulk_tiles * tile_rows, LANES)

    kernel = functools.partial(_tiled_kernel, inv_n=inv_n, lower=lower,
                               upper=upper, pw=pw)
    partials = pl.pallas_call(
        kernel,
        out_shape=jax.ShapeDtypeStruct((n_split, 8, LANES), jnp.float32),
        grid_spec=pltpu.PrefetchScalarGridSpec(
            num_scalar_prefetch=0,
            grid=(n_split, tiles_per_core),
            in_specs=[
                pl.BlockSpec((tile_rows, LANES),
                             lambda c, i: (c * tiles_per_core + i, 0)),
                pl.BlockSpec((tile_rows, LANES),
                             lambda c, i: (c * tiles_per_core + i, 0)),
            ],
            out_specs=pl.BlockSpec((1, 8, LANES), lambda c, i: (c, 0, 0)),
        ),
        compiler_params=pltpu.CompilerParams(
            dimension_semantics=("parallel", "arbitrary")),
        cost_estimate=pl.CostEstimate(flops=8 * bulk_elems, transcendentals=0,
                                      bytes_accessed=2 * bulk_elems * itemsize),
    )(p_bulk, t_bulk)

    total = jnp.sum(partials)

    # Ragged remainder (< 2 tiles, i.e. <= ~4 MiB f32): negligible next to the bulk,
    # computed in plain JAX so the big arrays are never padded/copied host-side.
    if bulk_elems < n_elems:
        total = total + jnp.sum(
            _fused_contrib(p_flat[bulk_elems:], t_flat[bulk_elems:],
                           inv_n=inv_n, lower=lower, upper=upper, pw=pw))
    return total


def _reference(predictions, targets, *, lower_bound=0.0, upper_bound=100.0,
               penalty_weight=1.0):
    loss = jnp.mean((predictions - targets) ** 2)
    pen_lo = jnp.sum(jax.nn.relu(lower_bound - predictions))
    pen_hi = jnp.sum(jax.nn.relu(predictions - upper_bound))
    return loss + penalty_weight * (pen_lo + pen_hi)


if __name__ == "__main__":
    key = jax.random.PRNGKey(0)
    k1, k2, k3, k4 = jax.random.split(key, 4)

    # Production-like small NCHW input -> single-block kernel path.
    shape = (2, 4, 16, 16)
    predictions = jax.random.uniform(k1, shape, jnp.float32, minval=-20.0, maxval=120.0)
    targets = jax.random.uniform(k2, shape, jnp.float32, minval=0.0, maxval=100.0)

    total = constrained_loss(predictions, targets,
                             lower_bound=0.0, upper_bound=100.0, penalty_weight=1.0)
    total = jax.block_until_ready(total)
    ref = _reference(predictions, targets,
                     lower_bound=0.0, upper_bound=100.0, penalty_weight=1.0)
    assert jnp.allclose(total, ref, rtol=1e-4, atol=1e-3), (total, ref)

    # Small ragged check exercising the multi-tile streaming path (tiny tile_rows so
    # it stays fast): 2-way "core" split over full tiles + plain-JAX tail.
    n = 8 * 128 * 5 + 37
    p2 = jax.random.uniform(k3, (n,), jnp.float32, minval=-20.0, maxval=120.0)
    t2 = jax.random.uniform(k4, (n,), jnp.float32, minval=0.0, maxval=100.0)
    total2 = constrained_loss(p2, t2, lower_bound=0.0, upper_bound=100.0,
                              penalty_weight=1.0, tile_rows=8)
    total2 = jax.block_until_ready(total2)
    ref2 = _reference(p2, t2, lower_bound=0.0, upper_bound=100.0, penalty_weight=1.0)
    assert jnp.allclose(total2, ref2, rtol=1e-4, atol=1e-3), (total2, ref2)

    print("KERNEL_OK")
</pallas_src>

<mosaic_0001>
module attributes {stable_mosaic.version = 11 : i64} {
  func.func @_single_block_kernel(%arg0: i32, %arg1: memref<16x128xf32, #tpu.memory_space<vmem>>, %arg2: memref<16x128xf32, #tpu.memory_space<vmem>>, %arg3: memref<1x1xf32, #tpu.memory_space<smem>>) attributes {dimension_semantics = [#tpu.dimension_semantics<arbitrary>], iteration_bounds = array<i64: 1>, scalar_prefetch = 0 : i64, scratch_operands = 0 : i64, tpu.core_type = #tpu.core_type<tc>, window_params = [{pipeline_mode = #tpu.pipeline_mode<synchronous>, transform_indices = @transform_0, window_bounds = array<i64: 16, 128>}, {pipeline_mode = #tpu.pipeline_mode<synchronous>, transform_indices = @transform_1, window_bounds = array<i64: 16, 128>}, {transform_indices = @transform_2, window_bounds = array<i64: 1, 1>}]} {
    %c0 = arith.constant 0 : index
    %c0_0 = arith.constant 0 : index
    %0 = vector.load %arg1[%c0, %c0_0] : memref<16x128xf32, #tpu.memory_space<vmem>>, vector<16x128xf32>
    %c0_1 = arith.constant 0 : index
    %c0_2 = arith.constant 0 : index
    %1 = vector.load %arg2[%c0_1, %c0_2] : memref<16x128xf32, #tpu.memory_space<vmem>>, vector<16x128xf32>
    %2 = arith.subf %0, %1 : vector<16x128xf32>
    %cst = arith.constant 0.000000e+00 : f32
    %3 = vector.broadcast %cst : f32 to vector<16x128xf32>
    %4 = arith.subf %3, %0 : vector<16x128xf32>
    %cst_3 = arith.constant 0.000000e+00 : f32
    %5 = vector.broadcast %cst_3 : f32 to vector<16x128xf32>
    %6 = arith.maximumf %4, %5 : vector<16x128xf32>
    %cst_4 = arith.constant 1.000000e+02 : f32
    %7 = vector.broadcast %cst_4 : f32 to vector<16x128xf32>
    %8 = arith.subf %0, %7 : vector<16x128xf32>
    %cst_5 = arith.constant 0.000000e+00 : f32
    %9 = vector.broadcast %cst_5 : f32 to vector<16x128xf32>
    %10 = arith.maximumf %8, %9 : vector<16x128xf32>
    %11 = arith.addf %6, %10 : vector<16x128xf32>
    %12 = arith.mulf %2, %2 : vector<16x128xf32>
    %cst_6 = arith.constant 4.8828125E-4 : f32
    %13 = vector.broadcast %cst_6 : f32 to vector<16x128xf32>
    %14 = arith.mulf %12, %13 : vector<16x128xf32>
    %cst_7 = arith.constant 1.000000e+00 : f32
    %15 = vector.broadcast %cst_7 : f32 to vector<16x128xf32>
    %16 = arith.mulf %11, %15 : vector<16x128xf32>
    %17 = arith.addf %14, %16 : vector<16x128xf32>
    %18 = vector.shape_cast %17 : vector<16x128xf32> to vector<1x16x128xf32>
    %cst_8 = arith.constant dense<0.000000e+00> : vector<1xf32>
    %19 = vector.multi_reduction <add>, %18, %cst_8 [1, 2] : vector<1x16x128xf32> to vector<1xf32>
    %20 = vector.shape_cast %19 : vector<1xf32> to vector<1x1x1xf32>
    %21 = vector.extract %20[0, 0, 0] : f32 from vector<1x1x1xf32>
    %c0_9 = arith.constant 0 : index
    %c0_10 = arith.constant 0 : index
    %22 = memref.load %arg3[%c0_9, %c0_10] : memref<1x1xf32, #tpu.memory_space<smem>>
    memref.store %21, %arg3[%c0_9, %c0_10] : memref<1x1xf32, #tpu.memory_space<smem>>
    return
  }
  func.func @transform_0(%arg0: i32) -> (i32, i32) {
    %c0_i32 = arith.constant 0 : i32
    %c0_i32_0 = arith.constant 0 : i32
    %c0_i32_1 = arith.constant 0 : i32
    return %c0_i32, %c0_i32_0 : i32, i32
  }
  func.func @transform_1(%arg0: i32) -> (i32, i32) {
    %c0_i32 = arith.constant 0 : i32
    %c0_i32_0 = arith.constant 0 : i32
    %c0_i32_1 = arith.constant 0 : i32
    return %c0_i32, %c0_i32_0 : i32, i32
  }
  func.func @transform_2(%arg0: i32) -> (i32, i32) {
    %c0_i32 = arith.constant 0 : i32
    %c0_i32_0 = arith.constant 0 : i32
    %c0_i32_1 = arith.constant 0 : i32
    return %c0_i32, %c0_i32_0 : i32, i32
  }
}

</mosaic_0001>

<bundles_post_ra>
// kernel: tpu_custom_call.1
= control target key start
LH: loop header
LB: loop body
LE: loop exit
PB: predicated region body
PF: predicated region fallthrough
CT: control target
= control target key end

     0   :  { %7 = vsyncpa [#allocation3], 0  ;;  %s181_s0 = inlined_call_operand.hbm [shape: f32[16,128], index: 0, kind: input, shape index: {}]   ;;  %s182_s1 = inlined_call_operand.hbm [shape: f32[16,128], index: 1, kind: input, shape index: {}]   ;;  %s183_s2 = inlined_call_operand.hbm [shape: f32[1,1], index: 2, kind: output, shape index: {}]  }
   0x1   :  { %8 = vsyncpa [#allocation6], 0 }
   0x2   :  { %9 = vsyncpa [#allocation4], 0  ;;  %s152_s9 = smov [#allocation2]  }
   0x3   :  { %s15_s10 = sshll.u32 %s152_s9, 4  ;;  %s16_s10 = int_to_ptr.vmem [resolvable:$true] %s15_s10 }
   0x4   :  { %s106_s11 = scalar_lea.vmem %s16_s10, 256  ;;  %p111_p1 = scmp.lt.s32.totalorder %s16_s10, %s16_s10 }
   0x5   :  { %p107_p0 = scmp.ne.s32.totalorder %s16_s10, %s106_s11  ;;  %p112_p2 = scmp.lt.s32.totalorder %s106_s11, %s106_s11 }
   0x7   :  { %p113_p3 = por %p112_p2, %p111_p1 }
   0x9   :  { %p114_p4 = pnand %p113_p3, %p107_p0 }
   0xb   :  { %117 = shalt.err (!%p114_p4)
}
   0xc   :  { %s153_s12 = smov 128   ;;  %s154_s13 = smov 8  }
   0xd   :  { %21 = dma.hbm_to_vmem [thread:$0]  %s181_s0, 256, %s16_s10, [#allocation3], %s153_s12, %s153_s12, %s154_s13  }
   0xe   :  { %s155_s16 = smov [#allocation5]  }
   0xf   :  { %s27_s17 = sshll.u32 %s155_s16, 4  ;;  %s28_s17 = int_to_ptr.vmem [resolvable:$true] %s27_s17 }
  0x10   :  { %s126_s18 = scalar_lea.vmem %s28_s17, 256  ;;  %p131_p6 = scmp.lt.s32.totalorder %s28_s17, %s28_s17 }
  0x11   :  { %p127_p5 = scmp.ne.s32.totalorder %s28_s17, %s126_s18  ;;  %p132_p7 = scmp.lt.s32.totalorder %s126_s18, %s126_s18 }
  0x13   :  { %p133_p8 = por %p132_p7, %p131_p6 }
  0x15   :  { %p134_p9 = pnand %p133_p8, %p127_p5 }
  0x17   :  { %137 = shalt.err (!%p134_p9)
}
  0x18   :  { %33 = dma.hbm_to_vmem [thread:$0]  %s182_s1, 256, %s28_s17, [#allocation6], %s153_s12, %s153_s12, %s154_s13  }
  0x19   :  { %146 = dma.done.wait [#allocation3], 256  }
  0x1a   :  { %147 = vsyncadd [#allocation3], 4294967040 }
  0x1b   :  { %148 = dma.done.wait [#allocation6], 256  }
  0x1c   :  { %149 = vsyncadd [#allocation6], 4294967040  ;;  %v40_v0 = vld [vmem:[#allocation2] sm:$0xff]  ;;  %v41_v1 = vld [vmem:[#allocation2 + $0x8] sm:$0xff]  ;;  %s156_s1 = smov [#allocation7]  }
  0x1d   :  { %v42_v2 = vld [vmem:[#allocation5] sm:$0xff]  ;;  %v43_v3 = vld [vmem:[#allocation5 + $0x8] sm:$0xff]  ;;  %v46_v5 = vsub.f32 0.0, %v40_v0  ;;  %v47_v6 = vsub.f32 0.0, %v41_v1  ;;  %v89_v7 = vadd.f32 -100.0, %v40_v0  ;;  %v90_v9 = vadd.f32 -100.0, %v41_v1 }
  0x1e   :  { %v44_v4 = vsub.f32 %v40_v0, %v42_v2  ;;  %v45_v8 = vsub.f32 %v41_v1, %v43_v3 }
  0x1f   :  { %v48_v10 = vmax.f32 %v46_v5, 0.0  ;;  %v49_v11 = vmax.f32 %v47_v6, 0.0  ;;  %v52_v12 = vmax.f32 %v89_v7, 0.0  ;;  %v53_v14 = vmax.f32 %v90_v9, 0.0 }
  0x20   :  { %v56_v13 = vmul.f32 %v44_v4, %v44_v4  ;;  %v57_v15 = vmul.f32 %v45_v8, %v45_v8 }
  0x21   :  { %v54_v16 = vadd.f32 %v52_v12, %v48_v10  ;;  %v55_v18 = vadd.f32 %v53_v14, %v49_v11 }
  0x22   :  { %v58_v17 = vmul.f32 0.00048828125, %v56_v13  ;;  %v59_v19 = vmul.f32 0.00048828125, %v57_v15 }
  0x24   :  { %v60_v20 = vadd.f32 %v58_v17, %v54_v16  ;;  %v61_v21 = vadd.f32 %v59_v19, %v55_v18 }
  0x26   :  { %v62_v22 = vadd.f32 %v61_v21, %v60_v20 }
  0x28   :  { %63 = vadd.xlane.f32.xlu0 %v62_v22 }
  0xb1   :  { %v64_v23 = vpop.xlane.xlu0 %63 }
  0xb2   :  { %v65_v24 = vrot.slane %v64_v23, 4 }
  0xb4   :  { %v66_v25 = vadd.f32 %v65_v24, %v64_v23 }
  0xb6   :  { %v67_v26 = vrot.slane %v66_v25, 2 }
  0xb8   :  { %v68_v27 = vadd.f32 %v67_v26, %v66_v25 }
  0xba   :  { %v69_v28 = vrot.slane %v68_v27, 1 }
  0xbc   :  { %v70_v29 = vadd.f32 %v69_v28, %v68_v27 }
  0xbe   :  { %91 = vpush %v70_v29 }
  0xef   :  { %s92_s0 = spop %91 }
  0xf0   :  { %73 = sst [smem:[#allocation7]] %s92_s0 }
  0xf1   :  { %81 = dma.smem_to_hbm %s156_s1, 16, %s183_s2, [#allocation4]  }
  0xf2   :  { %150 = dma.done.wait [#allocation4], 16  }
  0xf3   :  { %151 = vsyncadd [#allocation4], 4294967280 }
  0xf4   :  { %85 = sfence }
  0xf5   :  { %86 = vsyncpa [#allocation3], 1 }
  0xf6   :  { %87 = vsyncpa [#allocation6], 1 }
  0xf7   :  { %88 = vsyncpa [#allocation4], 1 }

</bundles_post_ra>
